<compile_context>
chip_gen: v6e
topology: v6e:2x2x1
jax: 0.10.0
libtpu: 0.0.40
codegen_flags: <defaults>
</compile_context>

<pallas_src>
import jax
import jax.numpy as jnp
from jax.experimental import pallas as pl
from jax.experimental.pallas import tpu as pltpu

MARGIN = 0.2
EPS = 1e-8


def _round_up(x, m):
    return ((x + m - 1) // m) * m


def _cdiv(a, b):
    return -(-a // b)


def _static_pow_decomposition(g):
    """If g is a static python scalar equal to k or k + 0.5 with a small
    non-negative integer k, return (k, use_sqrt) so x**g can be computed with
    VPU multiplies (+ at most one sqrt on the EUP).  Otherwise return None."""
    if isinstance(g, bool) or not isinstance(g, (int, float)):
        return None
    gf = float(g)
    if gf < 0.0 or gf > 16.0:
        return None
    k = int(gf)
    frac = gf - k
    if frac == 0.0:
        return (k, False)
    if frac == 0.5:
        return (k, True)
    return None


def _int_pow(x, n):
    """x ** n for a static non-negative integer n via repeated multiplies."""
    if n == 0:
        return jnp.ones_like(x)
    acc = None
    base = x
    while n > 0:
        if n & 1:
            acc = base if acc is None else acc * base
        n >>= 1
        if n > 0:
            base = base * base
    return acc


def _static_pow(x, decomp):
    """x ** (k [+ 0.5]) with torch.pow semantics for x >= 0 (0**0 == 1)."""
    k, use_sqrt = decomp
    y = _int_pow(x, k)
    if use_sqrt:
        y = y * jnp.sqrt(x)
    return y


def _pick_tile_rows(B, C, in_itemsize,
                    target_tile_bytes=2 * 1024 * 1024,
                    vmem_budget_bytes=36 * 1024 * 1024):
    """Byte-targeted batch-tile row count.

    Aim for ~target_tile_bytes of logits per tile (so the ~0.35 us per-grid-
    step overhead is amortized even when C is small), clamped so the real live
    VMEM set (double-buffered input tile, ~8 live f32 (TB,C) intermediates,
    and the lane-padded (TB,1) int32 targets block) stays within a budget that
    is safe on v7x (64 MiB physical) as well as v5e/v6e."""
    C = max(int(C), 1)
    live_per_row = (2 * C * in_itemsize   # double-buffered logits tile (native dtype)
                    + 8 * C * 4           # ~8 live f32 (TB, C) intermediates
                    + 2 * 128 * 4)        # (TB,1) int32 targets lane-padded to 128
    vmem_rows = max(8, (vmem_budget_bytes // live_per_row) // 8 * 8)
    target_rows = _round_up(max(8, _cdiv(target_tile_bytes, C * in_itemsize)), 8)
    return int(min(target_rows, vmem_rows)), int(live_per_row)


def _make_kernel(B, C, TB, chunk_tiles, neg_decomp, pos_decomp, needs_row_mask):
    pass_gneg = neg_decomp is None
    pass_gpos = pos_decomp is None

    def kernel(*refs):
        it = iter(refs)
        logits_ref = next(it)                      # (TB, C)
        targets_ref = next(it)                     # (TB, 1) int32
        gneg_ref = next(it) if pass_gneg else None  # (1, C) f32
        gpos_ref = next(it) if pass_gpos else None  # (1, C) f32
        out_ref = next(it)                         # (1, 1, C) f32 partial sums

        t = pl.program_id(1)

        @pl.when(t == 0)
        def _init():
            out_ref[...] = jnp.zeros_like(out_ref)

        x = logits_ref[...].astype(jnp.float32)    # (TB, C)
        tgt = targets_ref[...]                     # (TB, 1)

        if needs_row_mask:
            i = pl.program_id(0) * chunk_tiles + t
            row_ids = i * TB + jax.lax.broadcasted_iota(jnp.int32, (TB, 1), 0)
            valid = row_ids < B                    # (TB, 1) bool
            # Sanitize BEFORE exp/log: garbage tail rows (partial / OOB block
            # reads) must never produce Inf/NaN that survives the *0 mask.
            x = jnp.where(valid, x, 0.0)

        # Row softmax (classes on lanes); approx reciprocal + one Newton step.
        mx = jnp.max(x, axis=-1, keepdims=True)
        e = jnp.exp(x - mx)
        d = jnp.sum(e, axis=-1, keepdims=True)
        r = pl.reciprocal(d, approx=True)
        r = r * (2.0 - d * r)                      # Newton refine: rel err ~1e-6
        softmax = e * r

        class_ids = jax.lax.broadcasted_iota(jnp.int32, (TB, C), 1)
        is_target = class_ids == tgt               # (TB, C) bool (no f32 one-hot)

        # ---- negative term: dense over the (TB, C) tile --------------------
        shifted = jnp.maximum(softmax - MARGIN, 0.0)
        if neg_decomp is not None:
            pow_neg = _static_pow(shifted, neg_decomp)          # VPU (+<=1 sqrt)
        else:
            gneg = gneg_ref[...].astype(jnp.float32)            # (1, C)
            posm = shifted > 0.0
            safe = jnp.where(posm, shifted, 1.0)
            pw = jnp.exp(gneg * jnp.log(safe))                  # 1 log + 1 exp
            # torch semantics: 0**g = 0 for g>0, 0**0 = 1 (no NaNs).
            pow_neg = jnp.where(posm, pw, jnp.where(gneg > 0.0, 0.0, 1.0))
        term_neg = pow_neg * jnp.log(1.0 - shifted + EPS)       # (TB, C)

        # ---- positive term: exactly one value per row (target column) ------
        p_t = jnp.sum(jnp.where(is_target, softmax, 0.0), axis=-1, keepdims=True)
        base = 1.0 - p_t                                        # (TB, 1)
        if pos_decomp is not None:
            pow_pos = _static_pow(base, pos_decomp)
        else:
            gpos = gpos_ref[...].astype(jnp.float32)            # (1, C)
            gpos_t = jnp.sum(jnp.where(is_target, gpos, 0.0), axis=-1, keepdims=True)
            posb = base > 0.0
            safe = jnp.where(posb, base, 1.0)
            pw = jnp.exp(gpos_t * jnp.log(safe))
            pow_pos = jnp.where(posb, pw, jnp.where(gpos_t > 0.0, 0.0, 1.0))
        term_pos = pow_pos * jnp.log(p_t + EPS)                 # (TB, 1)

        # Fold the per-row positive term into the tile at the target column;
        # the reference's (1 - one_hot) factor zeroes exactly those slots.
        term = jnp.where(is_target, term_pos, term_neg)         # (TB, C)
        if needs_row_mask:
            term = jnp.where(valid, term, 0.0)

        # Per-lane partial sums: only a sublane (XLU) reduce per step; the
        # cross-lane reduce and the mean happen once, in the wrapper.
        out_ref[...] = out_ref[...] + jnp.sum(term, axis=0, keepdims=True)

    return kernel


def asymmetric_loss(logits, targets, gamma_neg, gamma_pos, *, tile_rows=None):
    """Multi-class asymmetric loss (AsymmetricLoss.forward, num_classes > 1).

    logits:  (B, C) float (any float dtype; cast to f32 in-kernel)
    targets: (B,)   integer class indices
    gamma_neg, gamma_pos: python scalar or (C,) per-class focusing params
    returns: scalar float32 loss
    """
    B, C = logits.shape
    itemsize = jnp.dtype(logits.dtype).itemsize

    neg_decomp = _static_pow_decomposition(gamma_neg)
    pos_decomp = _static_pow_decomposition(gamma_pos)

    auto_rows, live_per_row = _pick_tile_rows(B, C, itemsize)
    TB = int(tile_rows) if tile_rows is not None else auto_rows
    if B <= 8:
        TB = B                                   # single block == full array dim
    else:
        TB = max(8, min(_round_up(TB, 8), (B // 8) * 8))

    n_tiles = _cdiv(B, TB)
    num_chunks = 2 if n_tiles >= 2 else 1        # v7x: 2 TCs; serial on v5e/v6e
    chunk_tiles = _cdiv(n_tiles, num_chunks)
    covered_rows = num_chunks * chunk_tiles * TB
    needs_row_mask = covered_rows != B
    last_tile = n_tiles - 1

    if num_chunks * chunk_tiles == n_tiles:
        def row_block(c, t):
            return (c * chunk_tiles + t, 0)
    else:
        # Uneven chunk split: clamp the block index; the duplicated tile's rows
        # compute row_ids >= B and are fully masked in-kernel.
        def row_block(c, t):
            return (jnp.minimum(c * chunk_tiles + t, last_tile), 0)

    targets2d = targets.astype(jnp.int32).reshape(B, 1)

    in_specs = [
        pl.BlockSpec((TB, C), row_block),        # logits: batch-tiled
        pl.BlockSpec((TB, 1), row_block),        # targets: batch-tiled
    ]
    args = [logits, targets2d]
    if neg_decomp is None:
        gneg2d = jnp.broadcast_to(jnp.asarray(gamma_neg, jnp.float32), (C,)).reshape(1, C)
        in_specs.append(pl.BlockSpec((1, C), lambda c, t: (0, 0)))
        args.append(gneg2d)
    if pos_decomp is None:
        gpos2d = jnp.broadcast_to(jnp.asarray(gamma_pos, jnp.float32), (C,)).reshape(1, C)
        in_specs.append(pl.BlockSpec((1, C), lambda c, t: (0, 0)))
        args.append(gpos2d)

    kernel = _make_kernel(B=B, C=C, TB=TB, chunk_tiles=chunk_tiles,
                          neg_decomp=neg_decomp, pos_decomp=pos_decomp,
                          needs_row_mask=needs_row_mask)

    # Scoped VMEM limit from the real footprint; <= 48 MiB keeps v7x (64 MiB
    # physical) safe and raises v5e's 16 MiB default.
    footprint = live_per_row * TB + (1 << 20)
    vmem_limit = int(min(48 * 1024 * 1024,
                         max(16 * 1024 * 1024, footprint + 8 * 1024 * 1024)))

    general = (neg_decomp is None) or (pos_decomp is None)
    cost = pl.CostEstimate(
        flops=int(14 * B * C),
        transcendentals=int((4 if general else 2) * B * C),
        bytes_accessed=int(B * C * itemsize + B * 4 + num_chunks * C * 4),
    )

    partials = pl.pallas_call(
        kernel,
        out_shape=jax.ShapeDtypeStruct((num_chunks, 1, C), jnp.float32),
        grid=(num_chunks, chunk_tiles),
        in_specs=in_specs,
        out_specs=pl.BlockSpec((1, 1, C), lambda c, t: (c, 0, 0)),
        compiler_params=pltpu.CompilerParams(
            dimension_semantics=("parallel", "arbitrary"),
            vmem_limit_bytes=vmem_limit),
        cost_estimate=cost,
    )(*args)

    return -jnp.sum(partials) / float(B * C)


def _reference_loss(logits, targets, gneg_vec, gpos_vec):
    """Pure-JAX transcription of AsymmetricLoss.multi_class_asymmetric_loss."""
    C = logits.shape[-1]
    sm = jax.nn.softmax(logits.astype(jnp.float32), axis=-1)
    oh = jax.nn.one_hot(targets, C, dtype=jnp.float32)
    sh = jnp.maximum(sm - MARGIN, 0.0)
    t_neg = (1.0 - oh) * jnp.power(sh, gneg_vec[None, :]) * jnp.log(1.0 - sh + EPS)
    t_pos = oh * jnp.power(1.0 - sm, gpos_vec[None, :]) * jnp.log(sm + EPS)
    return -jnp.mean(t_neg + t_pos)


if __name__ == "__main__":
    # "Module init": AsymmetricLoss(gamma_neg=4.0, gamma_pos=1.0, num_classes=C)
    # broadcasts scalar gammas to per-class vectors of length C.
    num_classes = 16
    batch = 21  # not a multiple of 8 -> exercises partial blocks + row masking

    key = jax.random.PRNGKey(0)
    k_logits, k_tgt = jax.random.split(key)
    logits = jax.random.normal(k_logits, (batch, num_classes), jnp.float32)
    targets = jax.random.randint(k_tgt, (batch,), 0, num_classes, jnp.int32)
    ones = jnp.ones((num_classes,), jnp.float32)

    # 1) Common case: static integer gammas (fast path), auto tile sizing
    #    (two chunks across the parallel grid axis).
    loss1 = asymmetric_loss(logits, targets, 4.0, 1.0)
    jax.block_until_ready(loss1)
    ref1 = _reference_loss(logits, targets, 4.0 * ones, 1.0 * ones)
    assert jnp.allclose(loss1, ref1, rtol=1e-5, atol=1e-5), (loss1, ref1)

    # 2) Forced small tile -> odd tile count, exercises the clamped index_map.
    loss2 = asymmetric_loss(logits, targets, 4.0, 1.0, tile_rows=8)
    jax.block_until_ready(loss2)
    assert jnp.allclose(loss2, ref1, rtol=1e-5, atol=1e-5), (loss2, ref1)

    # 3) Mixed: per-class gamma_neg vector (general pow path) + static
    #    half-integer gamma_pos (int-pow * sqrt fast path).
    gneg_v = 2.0 + 0.25 * jnp.arange(num_classes, dtype=jnp.float32)
    loss3 = asymmetric_loss(logits, targets, gneg_v, 0.5, tile_rows=8)
    jax.block_until_ready(loss3)
    ref3 = _reference_loss(logits, targets, gneg_v, 0.5 * ones)
    assert jnp.allclose(loss3, ref3, rtol=1e-5, atol=1e-5), (loss3, ref3)

    # 4) Fully general: per-class vectors for both gammas.
    gpos_v = 0.75 * jnp.ones((num_classes,), jnp.float32)
    loss4 = asymmetric_loss(logits, targets, gneg_v, gpos_v)
    jax.block_until_ready(loss4)
    ref4 = _reference_loss(logits, targets, gneg_v, gpos_v)
    assert jnp.allclose(loss4, ref4, rtol=1e-5, atol=1e-5), (loss4, ref4)

    # 5) bf16 logits on the fast path (cast to f32 in-kernel).
    loss5 = asymmetric_loss(logits.astype(jnp.bfloat16), targets, 4.0, 1.0)
    jax.block_until_ready(loss5)
    ref5 = _reference_loss(logits.astype(jnp.bfloat16), targets, 4.0 * ones, 1.0 * ones)
    assert jnp.allclose(loss5, ref5, rtol=1e-5, atol=1e-5), (loss5, ref5)

    print("KERNEL_OK")
</pallas_src>

<mosaic_0001>
module attributes {stable_mosaic.version = 11 : i64} {
  func.func @kernel(%arg0: i32, %arg1: i32, %arg2: memref<16x16xf32, #tpu.memory_space<vmem>>, %arg3: memref<16x1xi32, #tpu.memory_space<vmem>>, %arg4: memref<1x1x16xf32, #tpu.memory_space<vmem>>) attributes {dimension_semantics = [#tpu.dimension_semantics<parallel>, #tpu.dimension_semantics<arbitrary>], iteration_bounds = array<i64: 2, 1>, scalar_prefetch = 0 : i64, scratch_operands = 0 : i64, tpu.core_type = #tpu.core_type<tc>, window_params = [{transform_indices = @transform_0, window_bounds = array<i64: 16, 16>}, {transform_indices = @transform_1, window_bounds = array<i64: 16, 1>}, {transform_indices = @transform_2, window_bounds = array<i64: 1, 1, 16>}]} {
    %c0_i32 = arith.constant 0 : i32
    %0 = arith.cmpi eq, %arg1, %c0_i32 : i32
    %1 = arith.extui %0 : i1 to i32
    %c0_i32_0 = arith.constant 0 : i32
    %2 = arith.cmpi ne, %1, %c0_i32_0 : i32
    scf.if %2 {
      %cst_23 = arith.constant 0.000000e+00 : f32
      %69 = vector.broadcast %cst_23 : f32 to vector<1x1x16xf32>
      %c0_24 = arith.constant 0 : index
      %c0_25 = arith.constant 0 : index
      %c0_26 = arith.constant 0 : index
      %70 = vector.load %arg4[%c0_24, %c0_25, %c0_26] : memref<1x1x16xf32, #tpu.memory_space<vmem>>, vector<1x1x16xf32>
      tpu.vector_store %arg4[%c0_24, %c0_25, %c0_26], %69 {strides = array<i32>} : memref<1x1x16xf32, #tpu.memory_space<vmem>>, vector<1x1x16xf32>,
    } else {
    }
    %c0 = arith.constant 0 : index
    %c0_1 = arith.constant 0 : index
    %3 = vector.load %arg2[%c0, %c0_1] : memref<16x16xf32, #tpu.memory_space<vmem>>, vector<16x16xf32>
    %c0_2 = arith.constant 0 : index
    %c0_3 = arith.constant 0 : index
    %4 = vector.load %arg3[%c0_2, %c0_3] : memref<16x1xi32, #tpu.memory_space<vmem>>, vector<16x1xi32>
    %c1_i32 = arith.constant 1 : i32
    %5 = arith.muli %arg0, %c1_i32 : i32
    %6 = arith.addi %5, %arg1 : i32
    %c16_i32 = arith.constant 16 : i32
    %7 = arith.muli %6, %c16_i32 : i32
    %8 = tpu.iota {dimensions = array<i32: 0>} : vector<16x1xi32>
    %9 = vector.broadcast %7 : i32 to vector<16x1xi32>
    %10 = arith.addi %9, %8 : vector<16x1xi32>
    %c21_i32 = arith.constant 21 : i32
    %11 = vector.broadcast %c21_i32 : i32 to vector<16x1xi32>
    %12 = arith.cmpi slt, %10, %11 : vector<16x1xi32>
    %cst = arith.constant 0.000000e+00 : f32
    %13 = vector.shape_cast %12 : vector<16x1xi1> to vector<16x1xi1>
    %14 = vector.broadcast %13 : vector<16x1xi1> to vector<16x16xi1>
    %15 = vector.broadcast %cst : f32 to vector<16x16xf32>
    %16 = arith.select %14, %3, %15 : vector<16x16xi1>, vector<16x16xf32>
    %cst_4 = arith.constant dense<0xFF800000> : vector<16xf32>
    %17 = vector.multi_reduction <maximumf>, %16, %cst_4 [1] : vector<16x16xf32> to vector<16xf32>
    %18 = vector.shape_cast %17 : vector<16xf32> to vector<16x1xf32>
    %19 = vector.broadcast %18 : vector<16x1xf32> to vector<16x16xf32>
    %20 = arith.subf %16, %19 : vector<16x16xf32>
    %21 = math.exp %20 : vector<16x16xf32>
    %cst_5 = arith.constant dense<0.000000e+00> : vector<16xf32>
    %22 = vector.multi_reduction <add>, %21, %cst_5 [1] : vector<16x16xf32> to vector<16xf32>
    %23 = vector.shape_cast %22 : vector<16xf32> to vector<16x1xf32>
    %24 = tpu.reciprocal %23 {approx = true} : vector<16x1xf32> -> vector<16x1xf32>
    %25 = arith.mulf %23, %24 : vector<16x1xf32>
    %cst_6 = arith.constant 2.000000e+00 : f32
    %26 = vector.broadcast %cst_6 : f32 to vector<16x1xf32>
    %27 = arith.subf %26, %25 : vector<16x1xf32>
    %28 = arith.mulf %24, %27 : vector<16x1xf32>
    %29 = vector.broadcast %28 : vector<16x1xf32> to vector<16x16xf32>
    %30 = arith.mulf %21, %29 : vector<16x16xf32>
    %31 = tpu.iota {dimensions = array<i32: 1>} : vector<16x16xi32>
    %32 = vector.broadcast %4 : vector<16x1xi32> to vector<16x16xi32>
    %33 = arith.cmpi eq, %31, %32 : vector<16x16xi32>
    %cst_7 = arith.constant 2.000000e-01 : f32
    %34 = vector.broadcast %cst_7 : f32 to vector<16x16xf32>
    %35 = arith.subf %30, %34 : vector<16x16xf32>
    %cst_8 = arith.constant 0.000000e+00 : f32
    %36 = vector.broadcast %cst_8 : f32 to vector<16x16xf32>
    %37 = arith.maximumf %35, %36 : vector<16x16xf32>
    %38 = arith.mulf %37, %37 : vector<16x16xf32>
    %39 = arith.mulf %38, %38 : vector<16x16xf32>
    %cst_9 = arith.constant 1.000000e+00 : f32
    %40 = vector.broadcast %cst_9 : f32 to vector<16x16xf32>
    %41 = arith.subf %40, %37 : vector<16x16xf32>
    %cst_10 = arith.constant 9.99999993E-9 : f32
    %42 = vector.broadcast %cst_10 : f32 to vector<16x16xf32>
    %43 = arith.addf %41, %42 : vector<16x16xf32>
    %44 = math.log %43 : vector<16x16xf32>
    %45 = arith.mulf %39, %44 : vector<16x16xf32>
    %cst_11 = arith.constant 0.000000e+00 : f32
    %46 = vector.broadcast %cst_11 : f32 to vector<16x16xf32>
    %47 = arith.select %33, %30, %46 : vector<16x16xi1>, vector<16x16xf32>
    %cst_12 = arith.constant dense<0.000000e+00> : vector<16xf32>
    %48 = vector.multi_reduction <add>, %47, %cst_12 [1] : vector<16x16xf32> to vector<16xf32>
    %49 = vector.shape_cast %48 : vector<16xf32> to vector<16x1xf32>
    %cst_13 = arith.constant 1.000000e+00 : f32
    %50 = vector.broadcast %cst_13 : f32 to vector<16x1xf32>
    %51 = arith.subf %50, %49 : vector<16x1xf32>
    %cst_14 = arith.constant 9.99999993E-9 : f32
    %52 = vector.broadcast %cst_14 : f32 to vector<16x1xf32>
    %53 = arith.addf %49, %52 : vector<16x1xf32>
    %54 = math.log %53 : vector<16x1xf32>
    %55 = arith.mulf %51, %54 : vector<16x1xf32>
    %56 = vector.shape_cast %55 : vector<16x1xf32> to vector<16x1xf32>
    %57 = vector.broadcast %56 : vector<16x1xf32> to vector<16x16xf32>
    %58 = arith.select %33, %57, %45 : vector<16x16xi1>, vector<16x16xf32>
    %cst_15 = arith.constant 0.000000e+00 : f32
    %59 = vector.shape_cast %12 : vector<16x1xi1> to vector<16x1xi1>
    %60 = vector.broadcast %59 : vector<16x1xi1> to vector<16x16xi1>
    %61 = vector.broadcast %cst_15 : f32 to vector<16x16xf32>
    %62 = arith.select %60, %58, %61 : vector<16x16xi1>, vector<16x16xf32>
    %c0_16 = arith.constant 0 : index
    %c0_17 = arith.constant 0 : index
    %c0_18 = arith.constant 0 : index
    %63 = vector.load %arg4[%c0_16, %c0_17, %c0_18] : memref<1x1x16xf32, #tpu.memory_space<vmem>>, vector<1x1x16xf32>
    %cst_19 = arith.constant dense<0.000000e+00> : vector<16xf32>
    %64 = vector.multi_reduction <add>, %62, %cst_19 [0] : vector<16x16xf32> to vector<16xf32>
    %65 = vector.shape_cast %64 : vector<16xf32> to vector<1x16xf32>
    %66 = vector.shape_cast %65 : vector<1x16xf32> to vector<1x1x16xf32>
    %67 = arith.addf %63, %66 : vector<1x1x16xf32>
    %c0_20 = arith.constant 0 : index
    %c0_21 = arith.constant 0 : index
    %c0_22 = arith.constant 0 : index
    %68 = vector.load %arg4[%c0_20, %c0_21, %c0_22] : memref<1x1x16xf32, #tpu.memory_space<vmem>>, vector<1x1x16xf32>
    tpu.vector_store %arg4[%c0_20, %c0_21, %c0_22], %67 {strides = array<i32>} : memref<1x1x16xf32, #tpu.memory_space<vmem>>, vector<1x1x16xf32>,
    return
  }
  func.func @transform_0(%arg0: i32, %arg1: i32) -> (i32, i32) {
    %c1_i32 = arith.constant 1 : i32
    %0 = arith.muli %arg0, %c1_i32 : i32
    %1 = arith.addi %0, %arg1 : i32
    %c0_i32 = arith.constant 0 : i32
    %c0_i32_0 = arith.constant 0 : i32
    return %1, %c0_i32 : i32, i32
  }
  func.func @transform_1(%arg0: i32, %arg1: i32) -> (i32, i32) {
    %c1_i32 = arith.constant 1 : i32
    %0 = arith.muli %arg0, %c1_i32 : i32
    %1 = arith.addi %0, %arg1 : i32
    %c0_i32 = arith.constant 0 : i32
    %c0_i32_0 = arith.constant 0 : i32
    return %1, %c0_i32 : i32, i32
  }
  func.func @transform_2(%arg0: i32, %arg1: i32) -> (i32, i32, i32) {
    %c0_i32 = arith.constant 0 : i32
    %c0_i32_0 = arith.constant 0 : i32
    %c0_i32_1 = arith.constant 0 : i32
    return %arg0, %c0_i32, %c0_i32_0 : i32, i32, i32
  }
}

</mosaic_0001>

<bundles_post_ra>
// kernel: tpu_custom_call.1
= control target key start
LH: loop header
LB: loop body
LE: loop exit
PB: predicated region body
PF: predicated region fallthrough
CT: control target
= control target key end

     0   :  { %7 = vsyncpa [#allocation3], 0  ;;  %s766_s0 = inlined_call_operand.vmem [shape: f32[21,16], index: 0, kind: input, shape index: {}]   ;;  %s767_s1 = inlined_call_operand.vmem [shape: s32[21,1], index: 1, kind: input, shape index: {}]   ;;  %s768_s2 = inlined_call_operand.hbm [shape: f32[2,1,16], index: 2, kind: output, shape index: {}]  }
   0x1   :  { %9 = vsyncpa [#allocation3 + $0x1], 0  ;;  %s623_s9 = smov 0   ;;  %s625_s10 = smov 0  }
   0x2   :  { %s627_s11 = smov 0   ;;  %s629_s12 = smov 0  }
   0x3   :  { %s631_s13 = smov 0   ;;  %s633_s14 = smov 0  }
   0x4 LB: > { %s437_s15 = sadd.s32 4294967295, %s603_s14   ;;  %s438_s16 = sadd.s32 4294967294, %s603_s14   ;;  %s603_s14 = sphi %s633_s14, %s15_s14   ;;  %s599_s13 = sphi %s631_s13, %s775_s13   ;;  %s595_s12 = sphi %s629_s12, %s774_s12   ;;  %s591_s11 = sphi %s627_s11, %s773_s11   ;;  %s587_s10 = sphi %s625_s10, %s772_s10   ;;  %s583_s9 = sphi %s623_s9, %s771_s9  }
   0x5   : > { %s27_s17 = sadd.s32 1, %s599_s13  ;;  %s90_s18 = sadd.s32 1, %s591_s11 }
   0x6   : > { %p29_p0 = scmp.ge.s32.totalorder %s27_s17, 2  ;;  %p100_p1 = scmp.ne.s32.totalorder %s591_s11, %s587_s10 }
   0x7   : > { %p101_p2 = scmp.eq.s32.totalorder %s437_s15, 1  ;;  %p106_p3 = scmp.ne.s32.totalorder %s587_s10, %s583_s9 }
   0x8   : > { %s777_s17 = smov (%p29_p0, %s27_s17), 0  ;;  %p107_p5 = scmp.eq.s32.totalorder %s438_s16, 1 }
   0x9   : > { %p663_p4 = por %p101_p2, %p100_p1  ;;  %s87_s20 = ssub.s32 %s599_s13, %s777_s17 }
   0xa   : > { %p441_p6 = scmp.ge.s32.totalorder %s603_s14, 1  ;;  %p88_p7 = scmp.eq.s32.totalorder %s87_s20, 0 }
   0xb   : > { %p670_p8 = por %p107_p5, %p106_p3  ;;  %p163_p9 = scmp.lt.s32.totalorder %s603_s14, 3 }
   0xc   : > { %s676_s22 = scalar_select %p88_p7, %s591_s11, %s90_s18  }
   0xd   : > { %p164_p10 = pnand %p441_p6, %p163_p9 }
   0xe   : > { %s442_s23 = sshll.u32 (!%p164_p10), %s595_s12, 1  ;;  %s446_s24 = sshll.u32 (!%p164_p10), %s595_s12, 4 }
   0xf   : > { %167 = sbr.rel (%p164_p10) target bundleno = 542 (0x21e), region = 28  ;;  %p205_p11 = scmp.lt.s32.totalorder (!%p164_p10), %s442_s23, 2 }
  0x10   : > { %s197_s4 = sand.u32 (!%p164_p10), 1, %s587_s10   ;;  %s360_s15 = scalar_lea.hbm (!%p164_p10), %s768_s2, %s446_s24 }
  0x11   : > { %s709_s5 = scalar_lea.vmem (!%p164_p10), [#allocation2], %s197_s4  ;;  %s350_s16 = scalar_lea.sflag (!%p164_p10), [#allocation3], %s197_s4 }
  0x12   : > { %s362_s6 = sshll.u32 (!%p164_p10), %s709_s5, 4  ;;  %s607_s20 = smov (!%p164_p10), [#allocation2]   ;;  %s363_s6 = int_to_ptr.vmem [resolvable:$true] %s362_s6 }
  0x13   : > { %s527_s18 = scalar_lea.vmem (!%p164_p10), %s363_s6, 16 }
  0x14   : > { %v243_v0 = vlaneseq  ;;  %v246_v1 = vstv %s446_s24  ;;  %s779_s23 = smov (!%p205_p11, %s442_s23), 2  ;;  %vm257_vm1 = vcmask 130048   ;;  %v605_v12 = vmov 0   ;;  %p528_p12 = scmp.ne.s32.totalorder %s363_s6, %s527_s18 }
  0x15   : > { %s443_s25 = sshll.u32 %s779_s23, 3  ;;  %509 = vset.pattern.permute.xlu0 %v605_v12  ;;  %510 = vset.pattern.permute.xlu1 %v605_v12  ;;  %vm235_vm5 = vcmask 122880   ;;  %v606_v44 = vmov 0.0   ;;  %s531_s23 = sshll.u32 %s607_s20, 4  ;;  %s532_s23 = int_to_ptr.vmem [resolvable:$false] %s531_s23 }
  0x16   : > { %v244_v2 = vshrl.u32 %v243_v0, 7  ;;  %s208_s28 = scalar_lea.vmem %s766_s0, %s443_s25  ;;  %s224_s3 = scalar_lea.vmem %s767_s1, %s443_s25  ;;  %v287_v29 = vand.u32 127, %v243_v0  ;;  %236 = vst.msk [vmem:[%s709_s5] sm:$0x1] %vm235_vm5, %v606_v44 }
  0x17   : > { %v237_v6 = vld [vmem:[%s208_s28] sm:$0xff]  ;;  %v238_v7 = vld [vmem:[%s208_s28 + $0x8] sm:$0xff]  ;;  %p529_p13 = pnand %p528_p12, %p663_p4  ;;  %s533_s25 = scalar_lea.vmem %s532_s23, 32 }
  0x18   : > { %v682_v3 = vadd.s32 %v246_v1, %v244_v2  ;;  %v245_v4 = vadd.s32 8, %v244_v2  ;;  %v239_v13 = vld [vmem:[%s224_s3] sm:$0xff]  ;;  %v240_v24 = vld [vmem:[%s224_s3 + $0x8] sm:$0xff]  ;;  %p534_p1 = scmp.lt.s32.totalorder %s363_s6, %s532_s23  ;;  %p535_p2 = scmp.lt.s32.totalorder %s533_s25, %s527_s18 }
  0x19   : > { %p530_p0 = pneg %p529_p13 }
  0x1a   : > { %vm249_vm0 = vcmp.lt.s32.totalorder %v682_v3, 21  ;;  %v688_v5 = vadd.s32 %v246_v1, %v245_v4  ;;  %p536_p3 = por %p535_p2, %p534_p1 }
  0x1b   : > { %v255_v8 = vsel %vm249_vm0, %v237_v6, 0.0 }
  0x1c   : > { %vm250_vm2 = vcmp.lt.s32.totalorder %v688_v5, 21  ;;  %v258_v9 = vsel %vm257_vm1, %v255_v8, -inf  ;;  %p537_p5 = pnand %p536_p3, %p530_p0 }
  0x1d   : > { %v256_v10 = vsel %vm250_vm2, %v238_v7, 0.0  ;;  %259 = vmax.xlane.f32.xlu0 %v258_v9 }
  0x1e   : > { %v261_v11 = vsel %vm257_vm1, %v256_v10, -inf }
  0x21   : > { %262 = vmax.xlane.f32.xlu0 %v261_v11 }
  0x37   : > { %289 = vperm.xlu0 %509, %v239_v13  }
  0xa6   : > { %v260_v14 = vpop.xlane.xlu0 %259 }
  0xa7   : > { %v264_v15 = vsub.f32 %v255_v8, %v260_v14 }
  0xa9   : > { %v266_v16 = vmul.f32 1.442695, %v264_v15 }
  0xaa   : > { %v263_v17 = vpop.xlane.xlu0 %262 }
  0xab   : > { %511 = vpow2.f32 %v266_v16  ;;  %v265_v18 = vsub.f32 %v256_v10, %v263_v17 }
  0xad   : > { %v268_v19 = vmul.f32 1.442695, %v265_v18 }
  0xaf   : > { %513 = vpow2.f32 %v268_v19 }
  0xb2   : > { %v290_v31 = vpop.permute.xlu0 %289 }
  0xb3   : > { %vm294_vm3 = vcmp.eq.s32.totalorder %v287_v29, %v290_v31 }
  0xb8   : > { %v512_v20 = vpop.eup %511 }
  0xb9   : > { %v270_v21 = vsel %vm257_vm1, %v512_v20, 0.0 }
  0xba   : > { %271 = vadd.xlane.f32.xlu1 %v270_v21 }
  0xbc   : > { %v514_v22 = vpop.eup %513 }
  0xbd   : > { %v273_v23 = vsel %vm257_vm1, %v514_v22, 0.0 }
  0xbe   : > { %274 = vadd.xlane.f32.xlu1 %v273_v23 }
  0xcf   : > { %292 = vperm.xlu1 %510, %v240_v24   ;;  %v336_v24 = vld [vmem:[%s709_s5] sm:$0x1] }
 0x143   : > { %v272_v25 = vpop.xlane.xlu1 %271 }
 0x144   : > { %515 = vrcp.f32 %v272_v25 }
 0x147   : > { %v275_v26 = vpop.xlane.xlu1 %274 }
 0x148   : > { %517 = vrcp.f32 %v275_v26 }
 0x14b   : > { %v293_v36 = vpop.permute.xlu1 %292 }
 0x14c   : > { %vm295_vm4 = vcmp.eq.s32.totalorder %v287_v29, %v293_v36 }
 0x151   : > { %v516_v27 = vpop.eup %515 }
 0x152   : > { %v278_v28 = vmul.f32 %v516_v27, %v272_v25 }
 0x154   : > { %v280_v30 = vsub.f32 2.0, %v278_v28 }
 0x155   : > { %v518_v32 = vpop.eup %517 }
 0x156   : > { %v282_v33 = vmul.f32 %v516_v27, %v280_v30  ;;  %v279_v34 = vmul.f32 %v518_v32, %v275_v26 }
 0x158   : > { %v281_v35 = vsub.f32 2.0, %v279_v34  ;;  %v284_v37 = vmul.f32 %v512_v20, %v282_v33 }
 0x15a   : > { %v283_v38 = vmul.f32 %v518_v32, %v281_v35  ;;  %v314_v39 = vsel %vm294_vm3, %v284_v37, 0.0  ;;  %v447_v45 = vadd.f32 -0.2, %v284_v37 }
 0x15b   : > { %v316_v40 = vsel %vm257_vm1, %v314_v39, 0.0 }
 0x15c   : > { %317 = vadd.xlane.f32.xlu1 %v316_v40  ;;  %v285_v41 = vmul.f32 %v514_v22, %v283_v38  ;;  %v298_v47 = vmax.f32 %v447_v45, 0.0 }
 0x15e   : > { %v315_v42 = vsel %vm295_vm4, %v285_v41, 0.0  ;;  %v448_v46 = vadd.f32 -0.2, %v285_v41  ;;  %v304_v49 = vsub.f32 1.0, %v298_v47  ;;  %v300_v58 = vmul.f32 %v298_v47, %v298_v47 }
 0x15f   : > { %v319_v43 = vsel %vm257_vm1, %v315_v42, 0.0 }
 0x160   : > { %320 = vadd.xlane.f32.xlu0 %v319_v43  ;;  %v299_v48 = vmax.f32 %v448_v46, 0.0  ;;  %v306_v51 = vadd.f32 1e-08, %v304_v49  ;;  %v302_v62 = vmul.f32 %v300_v58, %v300_v58 }
 0x162   : > { %v305_v50 = vsub.f32 1.0, %v299_v48  ;;  %519 = vlog2.f32 %v306_v51  ;;  %v301_v63 = vmul.f32 %v299_v48, %v299_v48 }
 0x164   : > { %v307_v52 = vadd.f32 1e-08, %v305_v50  ;;  %v303_v8 = vmul.f32 %v301_v63, %v301_v63 }
 0x166   : > { %521 = vlog2.f32 %v307_v52 }
 0x16f   : > { %v520_v57 = vpop.eup %519 }
 0x170   : > { %v309_v60 = vmul.f32 0.6931472, %v520_v57 }
 0x172   : > { %v312_v2 = vmul.f32 %v309_v60, %v302_v62 }
 0x173   : > { %v522_v59 = vpop.eup %521 }
 0x174   : > { %v311_v4 = vmul.f32 0.6931472, %v522_v59 }
 0x176   : > { %v313_v12 = vmul.f32 %v311_v4, %v303_v8 }
 0x1e5   : > { %v318_v53 = vpop.xlane.xlu1 %317 }
 0x1e6   : > { %v324_v54 = vadd.f32 1e-08, %v318_v53  ;;  %v322_v0 = vsub.f32 1.0, %v318_v53 }
 0x1e8   : > { %523 = vlog2.f32 %v324_v54 }
 0x1e9   : > { %v321_v55 = vpop.xlane.xlu0 %320 }
 0x1ea   : > { %v325_v56 = vadd.f32 1e-08, %v321_v55  ;;  %v323_v10 = vsub.f32 1.0, %v321_v55 }
 0x1ec   : > { %525 = vlog2.f32 %v325_v56 }
 0x1f5   : > { %v524_v61 = vpop.eup %523 }
 0x1f6   : > { %v327_v1 = vmul.f32 0.6931472, %v524_v61 }
 0x1f8   : > { %v330_v6 = vmul.f32 %v327_v1, %v322_v0 }
 0x1f9   : > { %v526_v7 = vpop.eup %525 }
 0x1fa   : > { %v332_v9 = vsel %vm294_vm3, %v330_v6, %v312_v2  ;;  %v329_v11 = vmul.f32 0.6931472, %v526_v7 }
 0x1fb   : > { %v334_v14 = vsel %vm249_vm0, %v332_v9, 0.0 }
 0x1fc   : > { %v331_v13 = vmul.f32 %v329_v11, %v323_v10  ;;  %v337_v17 = vsel %vm257_vm1, %v334_v14, 0.0 }
 0x1fe   : > { %v333_v15 = vsel %vm295_vm4, %v331_v13, %v313_v12 }
 0x1ff   : > { %v335_v16 = vsel %vm250_vm2, %v333_v15, 0.0 }
 0x200   : > { %v338_v18 = vsel %vm257_vm1, %v335_v16, 0.0 }
 0x201   : > { %v339_v19 = vadd.f32 %v338_v18, %v337_v17 }
 0x203   : > { %v340_v20 = vrot.slane %v339_v19, 4 }
 0x205   : > { %v341_v21 = vadd.f32 %v340_v20, %v339_v19 }
 0x207   : > { %v342_v22 = vrot.slane %v341_v21, 2 }
 0x209   : > { %v343_v23 = vadd.f32 %v342_v22, %v341_v21 }
 0x20b   : > { %v344_v3 = vrot.slane %v343_v23, 1 }
 0x20d   : > { %v345_v25 = vadd.f32 %v344_v3, %v343_v23 }
 0x20f   : > { %v346_v26 = vadd.f32 %v345_v25, %v336_v24 }
 0x211   : > { %348 = vst.msk [vmem:[%s709_s5] sm:$0x1] %vm235_vm5, %v346_v26 }
 0x212   : > { %540 = shalt.err (!%p537_p5)
}
 0x213   : > { %s541_s12 = scalar_lea.hbm %s360_s15, 16  ;;  %s545_s27 = scalar_lea.hbm %s768_s2, 32 }
 0x214   : > { %p542_p6 = scmp.ne.s32.totalorder %s360_s15, %s541_s12  ;;  %p546_p10 = scmp.lt.s32.totalorder %s360_s15, %s768_s2 }
 0x215   : > { %p547_p11 = scmp.lt.s32.totalorder %s545_s27, %s541_s12 }
 0x216   : > { %p543_p7 = pnand %p542_p6, %p663_p4 }
 0x217   : > { %p548_p12 = por %p547_p11, %p546_p10 }
 0x218   : > { %p544_p9 = pneg %p543_p7 }
 0x21a   : > { %p549_p13 = pnand %p548_p12, %p544_p9 }
 0x21c   : > { %552 = shalt.err (!%p549_p13)
}
 0x21d   : > { %452 = dma.vmem_to_hbm [thread:$0]  (%p663_p4), %s363_s6, 16, %s360_s15, %s350_s16  }
 0x21e PF: > { %p458_p0 = scmp.ge.s32.totalorder %s603_s14, 2  ;;  %s374_s30 = sand.u32 1, %s583_s9  }
 0x21f   : > { %s375_s3 = scalar_lea.sflag [#allocation3], %s374_s30 }
 0x220   : > { %p455_p1 = pnand %p458_p0, %p670_p8 }
 0x222   : > { %p456_p2 = pneg %p455_p1 }
 0x224   : > { %578 = dma.done.wait (%p456_p2), %s375_s3, 16  }
 0x225   : > { %580 = vsyncadd (%p456_p2), %s375_s3, 4294967280  ;;  %s15_s14 = sadd.s32 1, %s603_s14   ;;  %s771_s9 = smov %s587_s10 }
 0x226   : > { %p12_p3 = scmp.ge.s32.totalorder %s15_s14, 4   ;;  %s772_s10 = smov %s591_s11 }
 0x227   : > { %s773_s11 = smov %s676_s22  ;;  %s774_s12 = smov %s599_s13 }
 0x228   : > { %s775_s13 = smov %s777_s17  ;;  %14 = sbr.rel (!%p12_p3) target bundleno = 4 (0x4), region = 70 }
 0x22d   :  { %379 = vsyncpa [#allocation3], 1 }
 0x22e   :  { %381 = vsyncpa [#allocation3 + $0x1], 1 }

</bundles_post_ra>
